<compile_context>
chip_gen: v7x
topology: tpu7x:2x2x1
jax: 0.10.0
libtpu: 0.0.40
codegen_flags: <defaults>
</compile_context>

<pallas_src>
import math
from functools import partial

import jax
import jax.numpy as jnp
from jax import lax
from jax.experimental import pallas as pl
from jax.experimental.pallas import tpu as pltpu


def _round_up(x, n):
    return ((x + n - 1) // n) * n


def _tpu_vmem_capacity_bytes():
    """Best-effort per-core VMEM capacity; conservative fallback."""
    try:
        return int(pltpu.get_tpu_info().vmem_capacity_bytes), True
    except Exception:
        return 64 * 1024 * 1024, False   # size like v7x, but don't trust it


def _arcface_tile_kernel(f_ref, w_ref, y_ref, out_ref, fn_ref, *,
                         s, cos_m, sin_m, th, mm, easy_margin, num_classes,
                         class_tile, tiles_per_split, needs_mask):
    jt = pl.program_id(1)                      # class-tile (reduction) axis

    @pl.when(jt == 0)
    def _init():
        # F.normalize(features, dim=1); cached once per split as bf16 so the
        # per-tile MXU operand needs no repeated cast.
        f = f_ref[...].astype(jnp.float32)
        sumsq = jnp.sum(f * f, axis=1, keepdims=True)
        fn_ref[...] = (f * lax.rsqrt(jnp.maximum(sumsq, 1e-24))
                       ).astype(fn_ref.dtype)
        out_ref[...] = jnp.zeros_like(out_ref)

    # Column norms of this (bf16-streamed) weight tile, computed in f32.  The
    # scale is applied to the matmul OUTPUT (commutes with the contraction),
    # so no (E, tc) normalized-weight temporary / bf16 cast is materialized.
    w32 = w_ref[...].astype(jnp.float32)
    inv_wnorm = lax.rsqrt(
        jnp.maximum(jnp.sum(w32 * w32, axis=0, keepdims=True), 1e-24))

    cosine = jnp.dot(fn_ref[...], w_ref[...],
                     preferred_element_type=jnp.float32)
    cosine = jnp.clip(cosine * inv_wnorm, -1.0, 1.0)

    sine = jnp.sqrt(jnp.clip(1.0 - cosine * cosine, 0.0, 1.0))
    phi = cosine * cos_m - sine * sin_m
    if easy_margin:
        phi = jnp.where(cosine > 0.0, phi, cosine)
    else:
        phi = jnp.where(cosine > th, phi, cosine - mm)

    y = y_ref[...].astype(jnp.float32)
    logits = jnp.where(y > 0.5, phi, cosine) * s

    # Numerically stable binary_cross_entropy_with_logits, per element.
    per = (jnp.maximum(logits, 0.0) - logits * y +
           jnp.log1p(jnp.exp(-jnp.abs(logits))))

    n_lane_groups = class_tile // 128

    def _fold_lanes(x):
        # Fold 128-lane groups with plain VPU adds -> lane-dense (B, 128)
        # partial; the expensive cross-lane reduce is deferred to the host.
        acc = x[:, 0:128]
        for k in range(1, n_lane_groups):
            acc = acc + x[:, k * 128:(k + 1) * 128]
        return acc

    if needs_mask:  # static: only emitted if C was padded up to the tile grid
        js = pl.program_id(0)
        col0 = (js * tiles_per_split + jt) * class_tile

        @pl.when(col0 + class_tile <= num_classes)
        def _acc_full():                       # tile has no padded columns
            out_ref[...] += _fold_lanes(per)[None]

        @pl.when(col0 + class_tile > num_classes)
        def _acc_tail():                       # tail tile: mask padded cols
            cols = col0 + lax.broadcasted_iota(jnp.int32, per.shape, 1)
            out_ref[...] += _fold_lanes(
                jnp.where(cols < num_classes, per, 0.0))[None]
    else:
        out_ref[...] += _fold_lanes(per)[None]


def multilabel_arcface_loss(features, fc_weight, labels, *, s=10.0, m=0.5,
                            easy_margin=False, class_tile=None,
                            num_splits=None):
    """features: (B, E), fc_weight: (E, C), labels: (B, C) multi-hot."""
    features = jnp.asarray(features, jnp.float32)
    fc_weight = jnp.asarray(fc_weight)
    B, E = features.shape
    E2, C = fc_weight.shape
    assert E2 == E and labels.shape == (B, C)

    # Dominant HBM stream: keep the weight in bf16.  (In training, maintain
    # the copy fed to this loss persistently in bf16 to avoid a per-call
    # re-read of the f32 parameter.)
    if fc_weight.dtype != jnp.bfloat16:
        fc_weight = fc_weight.astype(jnp.bfloat16)
    # 0/1 multi-hot labels are exact in bf16; halves streamed label bytes.
    labels = jnp.asarray(labels, jnp.bfloat16)

    # ---- generation-aware sizing -------------------------------------------
    vmem_cap, vmem_cap_trusted = _tpu_vmem_capacity_bytes()
    small_vmem = vmem_cap < 100 * 1024 * 1024          # v7x-class (64 MiB)

    if class_tile is None:
        # Per-class-column bytes: double-buffered bf16 weight+label columns,
        # (E, tc) f32 norm temporaries, ~8 (B, tc) f32 elementwise temps.
        per_col = 2 * (E * 2 + B * 2) + 2 * E * 4 + 8 * B * 4
        budget = (8 if small_vmem else 24) * 1024 * 1024
        clamp = 2048 if small_vmem else 8192
        class_tile = max(256, min(clamp, (budget // per_col) // 256 * 256))
    tc = _round_up(min(int(class_tile), _round_up(C, 256)), 256)

    # ---- split the class range so v7x's two TensorCores each take a share.
    # On single-TensorCore v5e/v6e, default to one long reduction sequence.
    if num_splits is None:
        num_splits = 2 if (small_vmem and vmem_cap_trusted) else 1
    n_tiles_total = int(pl.cdiv(C, tc))
    ns = int(max(1, min(int(num_splits), n_tiles_total)))
    nt = int(pl.cdiv(n_tiles_total, ns))
    c_pad = ns * nt * tc

    if c_pad != C:
        fc_weight = jnp.pad(fc_weight, ((0, 0), (0, c_pad - C)))
        labels = jnp.pad(labels, ((0, 0), (0, c_pad - C)))

    cos_m = math.cos(m)
    sin_m = math.sin(m)
    th = math.cos(math.pi - m)
    mm = math.sin(math.pi - m) * m

    kernel = partial(
        _arcface_tile_kernel, s=float(s), cos_m=cos_m, sin_m=sin_m, th=th,
        mm=mm, easy_margin=bool(easy_margin), num_classes=C, class_tile=tc,
        tiles_per_split=nt, needs_mask=(c_pad != C))

    # Explicit VMEM budget, including the (E, tc) f32 norm intermediates.
    streamed = (2 * (E * tc * 2 + B * tc * 2)   # dbl-buffered bf16 w + labels
                + 2 * B * E * 4                 # features (f32)
                + 2 * B * 128 * 4)              # output partial blocks
    scratch = B * E * 2                          # bf16 normalized features
    temps = 2 * E * tc * 4 + 8 * B * tc * 4      # (E,tc) + (B,tc) f32 temps
    cap = (44 if small_vmem else 96) * 1024 * 1024
    vmem_limit = int(min(cap, max(8 * 1024 * 1024,
                                  int(1.5 * (streamed + scratch + temps)))))

    cost = pl.CostEstimate(
        flops=2 * B * E * c_pad,
        transcendentals=3 * B * c_pad,
        bytes_accessed=E * c_pad * 2 + B * c_pad * 2 + B * E * 4
                       + ns * B * 128 * 4)

    partials = pl.pallas_call(
        kernel,
        out_shape=jax.ShapeDtypeStruct((ns, B, 128), jnp.float32),
        grid_spec=pltpu.PrefetchScalarGridSpec(
            num_scalar_prefetch=0,
            grid=(ns, nt),
            in_specs=[
                pl.BlockSpec((B, E), lambda js, jt: (0, 0)),             # feat
                pl.BlockSpec((E, tc), lambda js, jt: (0, js * nt + jt)),  # fc
                pl.BlockSpec((B, tc), lambda js, jt: (0, js * nt + jt)),  # lbl
            ],
            out_specs=pl.BlockSpec((1, B, 128), lambda js, jt: (js, 0, 0)),
            scratch_shapes=[
                pltpu.VMEM((B, E), jnp.bfloat16),   # normalized features
            ],
        ),
        compiler_params=pltpu.CompilerParams(
            dimension_semantics=("parallel", "arbitrary"),
            vmem_limit_bytes=vmem_limit),
        cost_estimate=cost,
    )(features, fc_weight, labels)

    # Single cross-lane/sublane reduction + mean scale, done once on the host.
    return jnp.sum(partials) * (1.0 / float(B * C))


if __name__ == "__main__":
    # Small, TPU-friendly shapes: batch=8, embedding=128, classes=512.
    B, E, C = 8, 128, 512

    key = jax.random.PRNGKey(0)
    k_feat, k_fc, k_lab = jax.random.split(key, 3)

    features = jax.random.normal(k_feat, (B, E), dtype=jnp.float32)

    # Deterministic Xavier-uniform init of fc (embedding_size, num_classes);
    # cast once to bf16 (the copy a training loop would maintain persistently).
    bound = math.sqrt(6.0 / (E + C))
    fc = jax.random.uniform(k_fc, (E, C), dtype=jnp.float32,
                            minval=-bound, maxval=bound)
    fc_bf16 = fc.astype(jnp.bfloat16)

    # Multi-hot labels in {0, 1}.
    labels = (jax.random.uniform(k_lab, (B, C)) < 0.1).astype(jnp.float32)

    loss = multilabel_arcface_loss(features, fc_bf16, labels, s=10.0, m=0.5,
                                   easy_margin=False)
    jax.block_until_ready(loss)
    print("KERNEL_OK")
</pallas_src>

<mosaic_0001>
module attributes {stable_mosaic.version = 11 : i64} {
  func.func @_arcface_tile_kernel(%arg0: i32, %arg1: i32, %arg2: memref<8x128xf32, #tpu.memory_space<vmem>>, %arg3: memref<128x512xbf16, #tpu.memory_space<vmem>>, %arg4: memref<8x512xbf16, #tpu.memory_space<vmem>>, %arg5: memref<1x8x128xf32, #tpu.memory_space<vmem>>, %arg6: memref<8x128xbf16, #tpu.memory_space<vmem>>) attributes {dimension_semantics = [#tpu.dimension_semantics<parallel>, #tpu.dimension_semantics<arbitrary>], iteration_bounds = array<i64: 1, 1>, scalar_prefetch = 0 : i64, scratch_operands = 1 : i64, tpu.core_type = #tpu.core_type<tc>, window_params = [{pipeline_mode = #tpu.pipeline_mode<synchronous>, transform_indices = @transform_0, window_bounds = array<i64: 8, 128>}, {transform_indices = @transform_1, window_bounds = array<i64: 128, 512>}, {transform_indices = @transform_2, window_bounds = array<i64: 8, 512>}, {transform_indices = @transform_3, window_bounds = array<i64: 1, 8, 128>}]} {
    %c0_i32 = arith.constant 0 : i32
    %0 = arith.cmpi eq, %arg1, %c0_i32 : i32
    %1 = arith.extui %0 : i1 to i32
    %c0_i32_0 = arith.constant 0 : i32
    %2 = arith.cmpi ne, %1, %c0_i32_0 : i32
    scf.if %2 {
      %c0_29 = arith.constant 0 : index
      %c0_30 = arith.constant 0 : index
      %66 = vector.load %arg2[%c0_29, %c0_30] : memref<8x128xf32, #tpu.memory_space<vmem>>, vector<8x128xf32>
      %67 = arith.mulf %66, %66 : vector<8x128xf32>
      %cst_31 = arith.constant dense<0.000000e+00> : vector<8xf32>
      %68 = vector.multi_reduction <add>, %67, %cst_31 [1] : vector<8x128xf32> to vector<8xf32>
      %69 = vector.shape_cast %68 : vector<8xf32> to vector<8x1xf32>
      %cst_32 = arith.constant 1.000000e-24 : f32
      %70 = vector.broadcast %cst_32 : f32 to vector<8x1xf32>
      %71 = arith.maximumf %69, %70 : vector<8x1xf32>
      %72 = math.rsqrt %71 : vector<8x1xf32>
      %73 = vector.broadcast %72 : vector<8x1xf32> to vector<8x128xf32>
      %74 = arith.mulf %66, %73 : vector<8x128xf32>
      %75 = arith.truncf %74 : vector<8x128xf32> to vector<8x128xbf16>
      %c0_33 = arith.constant 0 : index
      %c0_34 = arith.constant 0 : index
      %76 = vector.load %arg6[%c0_33, %c0_34] : memref<8x128xbf16, #tpu.memory_space<vmem>>, vector<8x128xbf16>
      tpu.vector_store %arg6[%c0_33, %c0_34], %75 {strides = array<i32>} : memref<8x128xbf16, #tpu.memory_space<vmem>>, vector<8x128xbf16>,
      %cst_35 = arith.constant 0.000000e+00 : f32
      %77 = vector.broadcast %cst_35 : f32 to vector<1x8x128xf32>
      %c0_36 = arith.constant 0 : index
      %c0_37 = arith.constant 0 : index
      %c0_38 = arith.constant 0 : index
      %78 = vector.load %arg5[%c0_36, %c0_37, %c0_38] : memref<1x8x128xf32, #tpu.memory_space<vmem>>, vector<1x8x128xf32>
      tpu.vector_store %arg5[%c0_36, %c0_37, %c0_38], %77 {strides = array<i32>} : memref<1x8x128xf32, #tpu.memory_space<vmem>>, vector<1x8x128xf32>,
    } else {
    }
    %c0 = arith.constant 0 : index
    %c0_1 = arith.constant 0 : index
    %3 = vector.load %arg3[%c0, %c0_1] : memref<128x512xbf16, #tpu.memory_space<vmem>>, vector<128x512xbf16>
    %4 = arith.extf %3 : vector<128x512xbf16> to vector<128x512xf32>
    %5 = arith.mulf %4, %4 : vector<128x512xf32>
    %cst = arith.constant dense<0.000000e+00> : vector<512xf32>
    %6 = vector.multi_reduction <add>, %5, %cst [0] : vector<128x512xf32> to vector<512xf32>
    %7 = vector.shape_cast %6 : vector<512xf32> to vector<1x512xf32>
    %cst_2 = arith.constant 1.000000e-24 : f32
    %8 = vector.broadcast %cst_2 : f32 to vector<1x512xf32>
    %9 = arith.maximumf %7, %8 : vector<1x512xf32>
    %10 = math.rsqrt %9 : vector<1x512xf32>
    %c0_3 = arith.constant 0 : index
    %c0_4 = arith.constant 0 : index
    %11 = vector.load %arg6[%c0_3, %c0_4] : memref<8x128xbf16, #tpu.memory_space<vmem>>, vector<8x128xbf16>
    %c0_5 = arith.constant 0 : index
    %c0_6 = arith.constant 0 : index
    %12 = vector.load %arg3[%c0_5, %c0_6] : memref<128x512xbf16, #tpu.memory_space<vmem>>, vector<128x512xbf16>
    %cst_7 = arith.constant dense<0.000000e+00> : vector<8x512xf32>
    %13 = tpu.matmul %11, %12, %cst_7 {dimension_numbers = #tpu.dot_dimension_numbers<[1], [0], [0], [1], [0, 0, 1, 1], [], []>} : vector<8x128xbf16>, vector<128x512xbf16>, vector<8x512xf32> -> vector<8x512xf32>
    %14 = vector.broadcast %10 : vector<1x512xf32> to vector<8x512xf32>
    %15 = arith.mulf %13, %14 : vector<8x512xf32>
    %cst_8 = arith.constant -1.000000e+00 : f32
    %cst_9 = arith.constant 1.000000e+00 : f32
    %16 = vector.broadcast %cst_8 : f32 to vector<8x512xf32>
    %17 = arith.maximumf %16, %15 : vector<8x512xf32>
    %18 = vector.broadcast %cst_9 : f32 to vector<8x512xf32>
    %19 = arith.minimumf %18, %17 : vector<8x512xf32>
    %20 = arith.mulf %19, %19 : vector<8x512xf32>
    %cst_10 = arith.constant 1.000000e+00 : f32
    %21 = vector.broadcast %cst_10 : f32 to vector<8x512xf32>
    %22 = arith.subf %21, %20 : vector<8x512xf32>
    %cst_11 = arith.constant 0.000000e+00 : f32
    %cst_12 = arith.constant 1.000000e+00 : f32
    %23 = vector.broadcast %cst_11 : f32 to vector<8x512xf32>
    %24 = arith.maximumf %23, %22 : vector<8x512xf32>
    %25 = vector.broadcast %cst_12 : f32 to vector<8x512xf32>
    %26 = arith.minimumf %25, %24 : vector<8x512xf32>
    %27 = math.sqrt %26 : vector<8x512xf32>
    %cst_13 = arith.constant 0.87758255 : f32
    %28 = vector.broadcast %cst_13 : f32 to vector<8x512xf32>
    %29 = arith.mulf %19, %28 : vector<8x512xf32>
    %cst_14 = arith.constant 0.47942555 : f32
    %30 = vector.broadcast %cst_14 : f32 to vector<8x512xf32>
    %31 = arith.mulf %27, %30 : vector<8x512xf32>
    %32 = arith.subf %29, %31 : vector<8x512xf32>
    %cst_15 = arith.constant -0.87758255 : f32
    %33 = vector.broadcast %cst_15 : f32 to vector<8x512xf32>
    %34 = arith.cmpf ogt, %19, %33 : vector<8x512xf32>
    %cst_16 = arith.constant 0.239712775 : f32
    %35 = vector.broadcast %cst_16 : f32 to vector<8x512xf32>
    %36 = arith.subf %19, %35 : vector<8x512xf32>
    %37 = arith.select %34, %32, %36 : vector<8x512xi1>, vector<8x512xf32>
    %c0_17 = arith.constant 0 : index
    %c0_18 = arith.constant 0 : index
    %38 = vector.load %arg4[%c0_17, %c0_18] : memref<8x512xbf16, #tpu.memory_space<vmem>>, vector<8x512xbf16>
    %39 = arith.extf %38 : vector<8x512xbf16> to vector<8x512xf32>
    %cst_19 = arith.constant 5.000000e-01 : f32
    %40 = vector.broadcast %cst_19 : f32 to vector<8x512xf32>
    %41 = arith.cmpf ogt, %39, %40 : vector<8x512xf32>
    %42 = arith.select %41, %37, %19 : vector<8x512xi1>, vector<8x512xf32>
    %cst_20 = arith.constant 1.000000e+01 : f32
    %43 = vector.broadcast %cst_20 : f32 to vector<8x512xf32>
    %44 = arith.mulf %42, %43 : vector<8x512xf32>
    %cst_21 = arith.constant 0.000000e+00 : f32
    %45 = vector.broadcast %cst_21 : f32 to vector<8x512xf32>
    %46 = arith.maximumf %44, %45 : vector<8x512xf32>
    %47 = arith.mulf %44, %39 : vector<8x512xf32>
    %48 = arith.subf %46, %47 : vector<8x512xf32>
    %49 = math.absf %44 : vector<8x512xf32>
    %cst_22 = arith.constant 0.000000e+00 : f32
    %50 = vector.broadcast %cst_22 : f32 to vector<8x512xf32>
    %51 = arith.subf %50, %49 : vector<8x512xf32>
    %52 = math.exp %51 : vector<8x512xf32>
    %53 = math.log1p %52 : vector<8x512xf32>
    %54 = arith.addf %48, %53 : vector<8x512xf32>
    %c0_23 = arith.constant 0 : index
    %c0_24 = arith.constant 0 : index
    %c0_25 = arith.constant 0 : index
    %55 = vector.load %arg5[%c0_23, %c0_24, %c0_25] : memref<1x8x128xf32, #tpu.memory_space<vmem>>, vector<1x8x128xf32>
    %56 = vector.extract_strided_slice %54 {offsets = [0, 0], sizes = [8, 128], strides = [1, 1]} : vector<8x512xf32> to vector<8x128xf32>
    %57 = vector.extract_strided_slice %54 {offsets = [0, 128], sizes = [8, 128], strides = [1, 1]} : vector<8x512xf32> to vector<8x128xf32>
    %58 = arith.addf %56, %57 : vector<8x128xf32>
    %59 = vector.extract_strided_slice %54 {offsets = [0, 256], sizes = [8, 128], strides = [1, 1]} : vector<8x512xf32> to vector<8x128xf32>
    %60 = arith.addf %58, %59 : vector<8x128xf32>
    %61 = vector.extract_strided_slice %54 {offsets = [0, 384], sizes = [8, 128], strides = [1, 1]} : vector<8x512xf32> to vector<8x128xf32>
    %62 = arith.addf %60, %61 : vector<8x128xf32>
    %63 = vector.shape_cast %62 : vector<8x128xf32> to vector<1x8x128xf32>
    %64 = arith.addf %55, %63 : vector<1x8x128xf32>
    %c0_26 = arith.constant 0 : index
    %c0_27 = arith.constant 0 : index
    %c0_28 = arith.constant 0 : index
    %65 = vector.load %arg5[%c0_26, %c0_27, %c0_28] : memref<1x8x128xf32, #tpu.memory_space<vmem>>, vector<1x8x128xf32>
    tpu.vector_store %arg5[%c0_26, %c0_27, %c0_28], %64 {strides = array<i32>} : memref<1x8x128xf32, #tpu.memory_space<vmem>>, vector<1x8x128xf32>,
    return
  }
  func.func @transform_0(%arg0: i32, %arg1: i32) -> (i32, i32) {
    %c0_i32 = arith.constant 0 : i32
    %c0_i32_0 = arith.constant 0 : i32
    %c0_i32_1 = arith.constant 0 : i32
    return %c0_i32, %c0_i32_0 : i32, i32
  }
  func.func @transform_1(%arg0: i32, %arg1: i32) -> (i32, i32) {
    %c1_i32 = arith.constant 1 : i32
    %0 = arith.muli %arg0, %c1_i32 : i32
    %1 = arith.addi %0, %arg1 : i32
    %c0_i32 = arith.constant 0 : i32
    %c0_i32_0 = arith.constant 0 : i32
    return %c0_i32, %1 : i32, i32
  }
  func.func @transform_2(%arg0: i32, %arg1: i32) -> (i32, i32) {
    %c1_i32 = arith.constant 1 : i32
    %0 = arith.muli %arg0, %c1_i32 : i32
    %1 = arith.addi %0, %arg1 : i32
    %c0_i32 = arith.constant 0 : i32
    %c0_i32_0 = arith.constant 0 : i32
    return %c0_i32, %1 : i32, i32
  }
  func.func @transform_3(%arg0: i32, %arg1: i32) -> (i32, i32, i32) {
    %c0_i32 = arith.constant 0 : i32
    %c0_i32_0 = arith.constant 0 : i32
    %c0_i32_1 = arith.constant 0 : i32
    return %arg0, %c0_i32, %c0_i32_0 : i32, i32, i32
  }
}

</mosaic_0001>

<bundles_post_ra>
// kernel: tpu_custom_call.1
= control target key start
LH: loop header
LB: loop body
LE: loop exit
PB: predicated region body
PF: predicated region fallthrough
CT: control target
= control target key end

     0   :  { %8 = vsyncpa [#allocation4], 0  ;;  %s1220_s0 = inlined_call_operand.hbm [shape: f32[8,128], index: 0, kind: input, shape index: {}]   ;;  %s1221_s1 = inlined_call_operand.hbm [shape: bf16[128,512], index: 1, kind: input, shape index: {}]   ;;  %s1222_s2 = inlined_call_operand.hbm [shape: bf16[8,512], index: 2, kind: input, shape index: {}]   ;;  %s1223_s3 = inlined_call_operand.hbm [shape: f32[1,8,128], index: 3, kind: output, shape index: {}]  }
   0x1   :  { %9 = vsyncpa [#allocation7], 0 }
   0x2   :  { %10 = vsyncpa [#allocation5], 0  ;;  %s1034_s12 = smov [#allocation6]   ;;  %s876_s16 = scalar_lea.hbm %s1221_s1, 4096 }
   0x3   :  { %s30_s13 = sshll.u32 %s1034_s12, 4  ;;  %p877_p0 = scmp.ne.s32.totalorder %s1221_s1, %s876_s16  ;;  %s31_s13 = int_to_ptr.vmem [resolvable:$true] %s30_s13 }
   0x4   :  { %p880_p1 = scmp.lt.u32.totalorder %s876_s16, %s1221_s1 }
   0x6   :  { %p882_p2 = pnand %p880_p1, %p877_p0 }
   0x8   :  { %885 = shalt.err (!%p882_p2)
}
   0x9   :  { %s886_s21 = scalar_lea.vmem %s31_s13, 4096  ;;  %p891_p4 = scmp.lt.s32.totalorder %s31_s13, %s31_s13 }
   0xa   :  { %p887_p3 = scmp.ne.s32.totalorder %s31_s13, %s886_s21  ;;  %p892_p5 = scmp.lt.s32.totalorder %s886_s21, %s886_s21 }
   0xc   :  { %p893_p6 = por %p892_p5, %p891_p4 }
   0xe   :  { %p894_p7 = pnand %p893_p6, %p887_p3 }
  0x10   :  { %897 = shalt.err (!%p894_p7)
}
  0x11   :  { %s1035_s22 = smov 256   ;;  %s1036_s23 = smov 16  }
  0x12   :  { %36 = dma.hbm_to_vmem [thread:$0]  %s1221_s1, 4096, %s31_s13, [#allocation7], %s1035_s22, %s1035_s22, %s1036_s23  }
  0x13   :  { %s1037_s26 = smov [#allocation3]   ;;  %s1038_s28 = smov [#allocation8]  }
  0x14   :  { %s17_s27 = sshll.u32 %s1037_s26, 4  ;;  %s47_s29 = sshll.u32 %s1038_s28, 4  ;;  %s18_s27 = int_to_ptr.vmem [resolvable:$true] %s17_s27  ;;  %s48_s29 = int_to_ptr.vmem [resolvable:$true] %s47_s29 }
  0x15   :  { %s898_s5 = scalar_lea.hbm %s1220_s0, 128 }
  0x16   :  { %p899_p8 = scmp.ne.s32.totalorder %s1220_s0, %s898_s5  ;;  %p902_p9 = scmp.lt.u32.totalorder %s898_s5, %s1220_s0 }
  0x18   :  { %p904_p10 = pnand %p902_p9, %p899_p8 }
  0x1a   :  { %907 = shalt.err (!%p904_p10)
}
  0x1b   :  { %s908_s1 = scalar_lea.vmem %s18_s27, 128  ;;  %p913_p12 = scmp.lt.s32.totalorder %s18_s27, %s18_s27 }
  0x1c   :  { %p909_p11 = scmp.ne.s32.totalorder %s18_s27, %s908_s1  ;;  %p914_p13 = scmp.lt.s32.totalorder %s908_s1, %s908_s1 }
  0x1e   :  { %p915_p0 = por %p914_p13, %p913_p12 }
  0x20   :  { %p916_p1 = pnand %p915_p0, %p909_p11 }
  0x22   :  { %919 = shalt.err (!%p916_p1)
}
  0x23   :  { %20 = dma.hbm_to_vmem [thread:$0]  %s1220_s0, 128, %s18_s27, [#allocation4]  }
  0x24   :  { %s920_s14 = scalar_lea.hbm %s1222_s2, 256 }
  0x25   :  { %p921_p2 = scmp.ne.s32.totalorder %s1222_s2, %s920_s14  ;;  %p924_p3 = scmp.lt.u32.totalorder %s920_s14, %s1222_s2 }
  0x27   :  { %p926_p4 = pnand %p924_p3, %p921_p2 }
  0x29   :  { %929 = shalt.err (!%p926_p4)
}
  0x2a   :  { %s930_s19 = scalar_lea.vmem %s48_s29, 256  ;;  %p935_p6 = scmp.lt.s32.totalorder %s48_s29, %s48_s29 }
  0x2b   :  { %p931_p5 = scmp.ne.s32.totalorder %s48_s29, %s930_s19  ;;  %p936_p7 = scmp.lt.s32.totalorder %s930_s19, %s930_s19 }
  0x2d   :  { %p937_p8 = por %p936_p7, %p935_p6 }
  0x2f   :  { %p938_p9 = pnand %p937_p8, %p931_p5 }
  0x31   :  { %941 = shalt.err (!%p938_p9)
}
  0x32   :  { %50 = dma.hbm_to_vmem [thread:$0]  %s1222_s2, 256, %s48_s29, [#allocation7]  }
  0x33   :  { %964 = dma.done.wait [#allocation4], 128  }
  0x34   :  { %965 = vsyncadd [#allocation4], 4294967168 }
  0x35   :  { %966 = dma.done.wait [#allocation7], 4352  }
  0x36   :  { %967 = vsyncadd [#allocation7], 4294962944  ;;  %v1098_v0 = vld [vmem:[#allocation3] sm:$0xff]  ;;  %v79_v1 = vld [vmem:[#allocation6] sm:$0xff]  ;;  %s1041_s2 = smov [#allocation9]  }
  0x37   :  { %v81_v2 = vld [vmem:[#allocation6 + $0x10] sm:$0xff]  ;;  %v70_v3 = vmul.f32 %v1098_v0, %v1098_v0  ;;  %v80_v4 = vld [vmem:[#allocation6 + $0x8] sm:$0xff]  ;;  %v82_v6 = vld [vmem:[#allocation6 + $0x18] sm:$0xff]  ;;  %970 = vmul.bf16.f32.vacc0 %v79_v1, %v79_v1  ;;  %s752_s21 = sshll.u32 %s1041_s2, 4  ;;  %s753_s21 = int_to_ptr.vmem [resolvable:$true] %s752_s21 }
  0x38   :  { %v763_v5 = vcombine.high %v79_v1, %v81_v2  ;;  %971 = vmac.bf16.f32.vacc0 %v81_v2, %v81_v2  ;;  %v765_v7 = vcombine.high %v80_v4, %v82_v6  ;;  %v762_v8 = vcombine.low %v79_v1, %v81_v2  ;;  %v83_v9 = vld [vmem:[#allocation6 + $0x20] sm:$0xff]  ;;  %v85_v10 = vld [vmem:[#allocation6 + $0x30] sm:$0xff]  ;;  %v84_v12 = vld [vmem:[#allocation6 + $0x28] sm:$0xff]  ;;  %s942_s22 = scalar_lea.vmem %s753_s21, 128  ;;  %p947_p11 = scmp.lt.s32.totalorder %s753_s21, %s753_s21 }
  0x39   :  { %71 = vadd.xlane.f32.xlu0 %v70_v3  ;;  %v764_v11 = vcombine.low %v80_v4, %v82_v6  ;;  %1002 = vmul.bf16.f32.vacc1 %v80_v4, %v80_v4  ;;  %v767_v13 = vcombine.high %v83_v9, %v85_v10  ;;  %v86_v14 = vld [vmem:[#allocation6 + $0x38] sm:$0xff]  ;;  %972 = vmac.bf16.f32.vacc0 %v83_v9, %v83_v9  ;;  %v87_v18 = vld [vmem:[#allocation6 + $0x40] sm:$0xff]  ;;  %v89_v19 = vld [vmem:[#allocation6 + $0x50] sm:$0xff]  ;;  %p943_p10 = scmp.ne.s32.totalorder %s753_s21, %s942_s22  ;;  %p948_p12 = scmp.lt.s32.totalorder %s942_s22, %s942_s22 }
  0x3a   :  { %492 = vmatprep.subr.bf16.mxu0 %v763_v5  ;;  %1003 = vmac.bf16.f32.vacc1 %v82_v6, %v82_v6  ;;  %533 = vmatprep.subr.bf16.mxu1 %v765_v7  ;;  %v769_v15 = vcombine.high %v84_v12, %v86_v14  ;;  %v766_v16 = vcombine.low %v83_v9, %v85_v10  ;;  %v88_v20 = vld [vmem:[#allocation6 + $0x48] sm:$0xff]  ;;  %v90_v22 = vld [vmem:[#allocation6 + $0x58] sm:$0xff]  ;;  %v91_v26 = vld [vmem:[#allocation6 + $0x60] sm:$0xff]  ;;  %v1039_v4 = vmov 1935823168  }
  0x3b   :  { %493 = vmatpush1.bf16.msra.mxu0 %v762_v8  ;;  %534 = vmatpush1.bf16.msra.mxu1 %v764_v11  ;;  %973 = vmac.bf16.f32.vacc0 %v85_v10, %v85_v10  ;;  %1004 = vmac.bf16.f32.vacc1 %v84_v12, %v84_v12  ;;  %v768_v17 = vcombine.low %v84_v12, %v86_v14  ;;  %v93_v27 = vld [vmem:[#allocation6 + $0x70] sm:$0xff]  ;;  %v92_v28 = vld [vmem:[#allocation6 + $0x68] sm:$0xff]  ;;  %v94_v30 = vld [vmem:[#allocation6 + $0x78] sm:$0xff]  ;;  %v990_v5 = vunpack.c.l.s4 %v1039_v4  ;;  %p949_p13 = por %p948_p12, %p947_p11 }
  0x3c   :  { %494 = vmatprep.subr.bf16.mxu0 %v767_v13  ;;  %535 = vmatprep.subr.bf16.mxu1 %v769_v15  ;;  %1005 = vmac.bf16.f32.vacc1 %v86_v14, %v86_v14  ;;  %v771_v21 = vcombine.high %v87_v18, %v89_v19  ;;  %v773_v23 = vcombine.high %v88_v20, %v90_v22  ;;  %v95_v34 = vld [vmem:[#allocation6 + $0x80] sm:$0xff]  ;;  %v97_v35 = vld [vmem:[#allocation6 + $0x90] sm:$0xff]  ;;  %v96_v36 = vld [vmem:[#allocation6 + $0x88] sm:$0xff]  ;;  %v992_v7 = vlaneseq }
  0x3d   :  { %v770_v24 = vcombine.low %v87_v18, %v89_v19  ;;  %v772_v25 = vcombine.low %v88_v20, %v90_v22  ;;  %v775_v29 = vcombine.high %v91_v26, %v93_v27  ;;  %v777_v31 = vcombine.high %v92_v28, %v94_v30  ;;  %v98_v38 = vld [vmem:[#allocation6 + $0x98] sm:$0xff]  ;;  %v99_v42 = vld [vmem:[#allocation6 + $0xa0] sm:$0xff]  ;;  %v101_v43 = vld [vmem:[#allocation6 + $0xb0] sm:$0xff]  ;;  %p950_p0 = pnand %p949_p13, %p943_p10 }
  0x3e   :  { %v774_v32 = vcombine.low %v91_v26, %v93_v27  ;;  %v776_v33 = vcombine.low %v92_v28, %v94_v30  ;;  %v779_v37 = vcombine.high %v95_v34, %v97_v35  ;;  %v781_v39 = vcombine.high %v96_v36, %v98_v38  ;;  %v100_v44 = vld [vmem:[#allocation6 + $0xa8] sm:$0xff]  ;;  %v102_v46 = vld [vmem:[#allocation6 + $0xb8] sm:$0xff]  ;;  %v103_v50 = vld [vmem:[#allocation6 + $0xc0] sm:$0xff] }
  0x3f   :  { %495 = vmatpush1.bf16.msra.mxu0 %v766_v16  ;;  %536 = vmatpush1.bf16.msra.mxu1 %v768_v17  ;;  %v778_v40 = vcombine.low %v95_v34, %v97_v35  ;;  %v780_v41 = vcombine.low %v96_v36, %v98_v38  ;;  %v783_v45 = vcombine.high %v99_v42, %v101_v43  ;;  %v105_v51 = vld [vmem:[#allocation6 + $0xd0] sm:$0xff]  ;;  %v104_v52 = vld [vmem:[#allocation6 + $0xc8] sm:$0xff]  ;;  %v106_v54 = vld [vmem:[#allocation6 + $0xd8] sm:$0xff]  ;;  %v991_v6 = vunpack.c.0.s8 %v990_v5 }
  0x40   :  { %496 = vmatprep.subr.bf16.mxu0 %v771_v21  ;;  %537 = vmatprep.subr.bf16.mxu1 %v773_v23  ;;  %v785_v47 = vcombine.high %v100_v44, %v102_v46  ;;  %v782_v48 = vcombine.low %v99_v42, %v101_v43  ;;  %v784_v49 = vcombine.low %v100_v44, %v102_v46  ;;  %v107_v58 = vld [vmem:[#allocation6 + $0xe0] sm:$0xff]  ;;  %v109_v59 = vld [vmem:[#allocation6 + $0xf0] sm:$0xff]  ;;  %v108_v60 = vld [vmem:[#allocation6 + $0xe8] sm:$0xff]  ;;  %v993_v8 = vshrl.u32 %v992_v7, 7 }
  0x41   :  { %v787_v53 = vcombine.high %v103_v50, %v105_v51  ;;  %v789_v55 = vcombine.high %v104_v52, %v106_v54  ;;  %v786_v56 = vcombine.low %v103_v50, %v105_v51  ;;  %v788_v57 = vcombine.low %v104_v52, %v106_v54  ;;  %v110_v62 = vld [vmem:[#allocation6 + $0xf8] sm:$0xff] }
  0x42   :  { %974 = vmac.bf16.f32.vacc0 %v87_v18, %v87_v18  ;;  %1006 = vmac.bf16.f32.vacc1 %v88_v20, %v88_v20  ;;  %v791_v61 = vcombine.high %v107_v58, %v109_v59  ;;  %v994_v9 = vsub.s32 %v991_v6, %v993_v8 }
  0x43   :  { %497 = vmatpush1.bf16.msra.mxu0 %v770_v24  ;;  %538 = vmatpush1.bf16.msra.mxu1 %v772_v25  ;;  %975 = vmac.bf16.f32.vacc0 %v89_v19, %v89_v19  ;;  %1007 = vmac.bf16.f32.vacc1 %v90_v22, %v90_v22  ;;  %v793_v12 = vcombine.high %v108_v60, %v110_v62  ;;  %v1040_v21 = vmov 0  }
  0x44   :  { %498 = vmatprep.subr.bf16.mxu0 %v775_v29  ;;  %539 = vmatprep.subr.bf16.mxu1 %v777_v31  ;;  %976 = vmac.bf16.f32.vacc0 %v91_v26, %v91_v26  ;;  %1008 = vmac.bf16.f32.vacc1 %v92_v28, %v92_v28  ;;  %v790_v13 = vcombine.low %v107_v58, %v109_v59 }
  0x45   :  { %977 = vmac.bf16.f32.vacc0 %v93_v27, %v93_v27  ;;  %1009 = vmac.bf16.f32.vacc1 %v94_v30, %v94_v30  ;;  %v792_v14 = vcombine.low %v108_v60, %v110_v62  ;;  %524 = vmatprep.mubr.bf16.mxu0 %v1040_v21  ;;  %565 = vmatprep.mubr.bf16.mxu1 %v1040_v21 }
  0x46   :  { %978 = vmac.bf16.f32.vacc0 %v95_v34, %v95_v34  ;;  %1010 = vmac.bf16.f32.vacc1 %v96_v36, %v96_v36 }
  0x47   :  { %499 = vmatpush1.bf16.msra.mxu0 %v774_v32  ;;  %540 = vmatpush1.bf16.msra.mxu1 %v776_v33  ;;  %979 = vmac.bf16.f32.vacc0 %v97_v35, %v97_v35  ;;  %1011 = vmac.bf16.f32.vacc1 %v98_v38, %v98_v38 }
  0x48   :  { %500 = vmatprep.subr.bf16.mxu0 %v779_v37  ;;  %541 = vmatprep.subr.bf16.mxu1 %v781_v39  ;;  %980 = vmac.bf16.f32.vacc0 %v99_v42, %v99_v42  ;;  %1012 = vmac.bf16.f32.vacc1 %v100_v44, %v100_v44 }
  0x49   :  { %981 = vmac.bf16.f32.vacc0 %v101_v43, %v101_v43  ;;  %1013 = vmac.bf16.f32.vacc1 %v102_v46, %v102_v46 }
  0x4a   :  { %982 = vmac.bf16.f32.vacc0 %v103_v50, %v103_v50  ;;  %1014 = vmac.bf16.f32.vacc1 %v104_v52, %v104_v52 }
  0x4b   :  { %501 = vmatpush1.bf16.msra.mxu0 %v778_v40  ;;  %542 = vmatpush1.bf16.msra.mxu1 %v780_v41  ;;  %983 = vmac.bf16.f32.vacc0 %v105_v51, %v105_v51  ;;  %1015 = vmac.bf16.f32.vacc1 %v106_v54, %v106_v54 }
  0x4c   :  { %502 = vmatprep.subr.bf16.mxu0 %v783_v45  ;;  %543 = vmatprep.subr.bf16.mxu1 %v785_v47  ;;  %984 = vmac.bf16.f32.vacc0 %v107_v58, %v107_v58  ;;  %1016 = vmac.bf16.f32.vacc1 %v108_v60, %v108_v60 }
  0x4d   :  { %985 = vmac.bf16.f32.vacc0 %v109_v59, %v109_v59  ;;  %1017 = vmac.bf16.f32.vacc1 %v110_v62, %v110_v62 }
  0x4f   :  { %503 = vmatpush1.bf16.msra.mxu0 %v782_v48  ;;  %544 = vmatpush1.bf16.msra.mxu1 %v784_v49  ;;  %v986_v63 = vmovacc.add.low.vacc0  ;;  %v1018_v15 = vmovacc.add.low.vacc1 }
  0x50   :  { %504 = vmatprep.subr.bf16.mxu0 %v787_v53  ;;  %545 = vmatprep.subr.bf16.mxu1 %v789_v55  ;;  %v987_v1 = vmovacc.add.high.vacc0  ;;  %v1019_v16 = vmovacc.add.high.vacc1 }
  0x52   :  { %v988_v2 = vcombine.low %v986_v63, %v987_v1  ;;  %v989_v3 = vcombine.high %v986_v63, %v987_v1  ;;  %v1020_v17 = vcombine.low %v1018_v15, %v1019_v16  ;;  %v1021_v18 = vcombine.high %v1018_v15, %v1019_v16 }
  0x53   :  { %505 = vmatpush1.bf16.msra.mxu0 %v786_v56  ;;  %546 = vmatpush1.bf16.msra.mxu1 %v788_v57 }
  0x54   :  { %506 = vmatprep.subr.bf16.mxu0 %v791_v61  ;;  %v995_v10 = vrot.slane %v988_v2, %v994_v9  ;;  %v1001_v11 = vrot.slane %v989_v3, %v994_v9  ;;  %547 = vmatprep.subr.bf16.mxu1 %v793_v12  ;;  %v1027_v19 = vrot.slane %v1020_v17, %v994_v9 }
  0x55   :  { %v1033_v20 = vrot.slane %v1021_v18, %v994_v9 }
  0x56   :  { %v254_v28 = vrot.slane %v995_v10, 4  ;;  %v296_v29 = vrot.slane %v1027_v19, 4  ;;  %v275_v30 = vrot.slane %v1001_v11, 4 }
  0x57   :  { %507 = vmatpush1.bf16.msra.mxu0 %v790_v13  ;;  %548 = vmatpush1.bf16.msra.mxu1 %v792_v14  ;;  %v317_v31 = vrot.slane %v1033_v20, 4 }
  0x58   :  { %v255_v32 = vadd.f32 %v995_v10, %v254_v28  ;;  %v297_v33 = vadd.f32 %v1027_v19, %v296_v29  ;;  %v276_v34 = vadd.f32 %v1001_v11, %v275_v30  ;;  %v1119_v28 = vld [vmem:[#allocation8] sm:$0xff]  ;;  %v1121_v29 = vld [vmem:[#allocation8 + $0x8] sm:$0xff] }
  0x59   :  { %v318_v35 = vadd.f32 %v1033_v20, %v317_v31  ;;  %v656_v30 = vunpack.c.l.bf16 %v1119_v28  ;;  %v658_v31 = vunpack.c.l.bf16 %v1121_v29 }
  0x5a   :  { %v256_v36 = vrot.slane %v255_v32, 2  ;;  %v298_v37 = vrot.slane %v297_v33, 2  ;;  %v277_v38 = vrot.slane %v276_v34, 2 }
  0x5b   :  { %v319_v39 = vrot.slane %v318_v35, 2  ;;  %vm1129_vm0 = vcmp.gt.f32.partialorder %v656_v30, 0.5  ;;  %vm1135_vm1 = vcmp.gt.f32.partialorder %v658_v31, 0.5 }
  0x5c   :  { %v257_v40 = vadd.f32 %v256_v36, %v255_v32  ;;  %v299_v41 = vadd.f32 %v298_v37, %v297_v33  ;;  %v657_v32 = vunpack.c.h.bf16 %v1119_v28  ;;  %v659_v37 = vunpack.c.h.bf16 %v1121_v29 }
  0x5d   :  { %v320_v42 = vadd.f32 %v319_v39, %v318_v35 }
  0x5e   :  { %v258_v43 = vrot.slane %v257_v40, 1  ;;  %v300_v44 = vrot.slane %v299_v41, 1  ;;  %vm1146_vm7 = vcmp.gt.f32.partialorder %v657_v32, 0.5  ;;  %vm1153_vm9 = vcmp.gt.f32.partialorder %v659_v37, 0.5 }
  0x5f   :  { %v321_v46 = vrot.slane %v320_v42, 1 }
  0x60   :  { %v259_v47 = vadd.f32 %v258_v43, %v257_v40  ;;  %v301_v48 = vadd.f32 %v300_v44, %v299_v41 }
  0x61   :  { %v322_v50 = vadd.f32 %v321_v46, %v320_v42 }
  0x62   :  { %v323_v51 = vmax.f32 %v259_v47, 1e-24  ;;  %v325_v52 = vmax.f32 %v301_v48, 1e-24 }
  0x63   :  { %v326_v54 = vmax.f32 %v322_v50, 1e-24 }
  0xc6   :  { %v72_v22 = vpop.xlane.xlu0 %71 }
  0xc7   :  { %v73_v23 = vmax.f32 %v72_v22, 1e-24 }
  0xc9   :  { %842 = vrsqrt.f32 %v73_v23 }
  0xca   :  { %844 = vrsqrt.f32 %v323_v51 }
  0xcb   :  { %846 = vrsqrt.f32 %v325_v52 }
  0xd3   :  { %v843_v24 = vpop.eup %842 }
  0xd4   :  { %v75_v25 = vmul.f32 %v843_v24, %v1098_v0  ;;  %v278_v0 = vadd.f32 %v277_v38, %v276_v34  ;;  %v845_v55 = vpop.eup %844 }
  0xd5   :  { %v847_v56 = vpop.eup %846 }
  0xd6   :  { %v76_v26 = vpack.c.bf16 %v75_v25, %v75_v25  ;;  %v279_v45 = vrot.slane %v278_v0, 1 }
  0xd8   :  { %77 = vst [vmem:[#allocation2] sm:$0xf] %v76_v26  ;;  %v280_v49 = vadd.f32 %v279_v45, %v278_v0 }
  0xda   :  { %v324_v53 = vmax.f32 %v280_v49, 1e-24 }
  0xdc   :  { %848 = vrsqrt.f32 %v324_v53 }
  0xdd   :  { %850 = vrsqrt.f32 %v326_v54 }
  0xdf   :  { %v331_v27 = vld [vmem:[#allocation2] sm:$0xf] }
  0xe0   :  { %525 = vmatmul.mubr.bf16.vlgmr.msra.gmra.mrb[0].mxu0 %v331_v27  ;;  %566 = vmatmul.mubr.bf16.vlgmr.msra.gmra.mrb[0].mxu1 %v331_v27 }
  0xe6   :  { %v849_v57 = vpop.eup %848 }
  0xe7   :  { %v851_v58 = vpop.eup %850 }
 0x1b3   :  { %v526_v59 = vpop.f32.mrb[0].mxu0  ;;  %v567_v60 = vpop.f32.mrb[0].mxu1 }
 0x1b4   :  { %v574_v61 = vmul.f32 %v845_v55, %v526_v59  ;;  %v576_v62 = vmul.f32 %v847_v56, %v567_v60  ;;  %v528_v63 = vpop.f32.mrb[1].mxu0  ;;  %v569_v1 = vpop.f32.mrb[1].mxu1 }
 0x1b5   :  { %v575_v2 = vmul.f32 %v849_v57, %v528_v63  ;;  %v577_v3 = vmul.f32 %v851_v58, %v569_v1  ;;  %v530_v4 = vpop.f32.mrb[2].mxu0  ;;  %v571_v5 = vpop.f32.mrb[2].mxu1 }
 0x1b6   :  { %v1103_v6 = vclamps-f32 %v574_v61, 1.0  ;;  %v1105_v7 = vclamps-f32 %v576_v62, 1.0  ;;  %v531_v8 = vpop.f32.mrb[3].mxu0  ;;  %v572_v9 = vpop.f32.mrb[3].mxu1 }
 0x1b7   :  { %v1107_v10 = vclamps-f32 %v575_v2, 1.0  ;;  %v1109_v11 = vclamps-f32 %v577_v3, 1.0 }
 0x1b8   :  { %v586_v12 = vmul.f32 %v1103_v6, %v1103_v6  ;;  %v588_v13 = vmul.f32 %v1105_v7, %v1105_v7  ;;  %v630_v34 = vmul.f32 0.87758255, %v1103_v6  ;;  %vm642_vm2 = vcmp.gt.f32.partialorder %v1103_v6, -0.87758255 }
 0x1b9   :  { %v587_v15 = vmul.f32 %v1107_v10, %v1107_v10  ;;  %v589_v17 = vmul.f32 %v1109_v11, %v1109_v11  ;;  %v798_v40 = vadd.f32 -0.23971277, %v1103_v6  ;;  %v632_v41 = vmul.f32 0.87758255, %v1105_v7 }
 0x1ba   :  { %v590_v14 = vsub.f32 1.0, %v586_v12  ;;  %v592_v16 = vsub.f32 1.0, %v588_v13  ;;  %vm644_vm4 = vcmp.gt.f32.partialorder %v1105_v7, -0.87758255  ;;  %v800_v49 = vadd.f32 -0.23971277, %v1105_v7 }
 0x1bb   :  { %v591_v19 = vsub.f32 1.0, %v587_v15  ;;  %v593_v21 = vsub.f32 1.0, %v589_v17  ;;  %v631_v2 = vmul.f32 0.87758255, %v1107_v10  ;;  %v633_v9 = vmul.f32 0.87758255, %v1109_v11 }
 0x1bc   :  { %v594_v18 = vmax.f32 %v590_v14, 0.0  ;;  %v596_v20 = vmax.f32 %v592_v16, 0.0  ;;  %v799_v16 = vadd.f32 -0.23971277, %v1107_v10  ;;  %vm643_vm14 = vcmp.gt.f32.partialorder %v1107_v10, -0.87758255 }
 0x1bd   :  { %v595_v23 = vmax.f32 %v591_v19, 0.0  ;;  %v597_v25 = vmax.f32 %v593_v21, 0.0  ;;  %vm645_vm15 = vcmp.gt.f32.partialorder %v1109_v11, -0.87758255 }
 0x1be   :  { %v598_v22 = vmin.f32 %v594_v18, 1.0  ;;  %v600_v24 = vmin.f32 %v596_v20, 1.0  ;;  %v801_v18 = vadd.f32 -0.23971277, %v1109_v11 }
 0x1bf   :  { %v599_v26 = vmin.f32 %v595_v23, 1.0  ;;  %v601_v27 = vmin.f32 %v597_v25, 1.0 }
 0x1c0   :  { %852 = vrsqrt.f32 %v598_v22  ;;  %vm604_vm3 = vcmp.eq.f32.partialorder %v598_v22, inf  ;;  %v607_v0 = vand.u32 2147483648, %v598_v22  ;;  %vm606_vm5 = vcmp.eq.f32.partialorder %v598_v22, 0.0 }
 0x1c1   :  { %854 = vrsqrt.f32 %v600_v24  ;;  %vm618_vm6 = vcmp.eq.f32.partialorder %v600_v24, inf  ;;  %v621_v44 = vand.u32 2147483648, %v600_v24  ;;  %vm620_vm8 = vcmp.eq.f32.partialorder %v600_v24, 0.0 }
 0x1c2   :  { %856 = vrsqrt.f32 %v599_v26  ;;  %vm611_vm10 = vcmp.eq.f32.partialorder %v599_v26, inf  ;;  %vm613_vm11 = vcmp.eq.f32.partialorder %v599_v26, 0.0  ;;  %v614_v56 = vand.u32 2147483648, %v599_v26 }
 0x1c3   :  { %858 = vrsqrt.f32 %v601_v27  ;;  %vm625_vm12 = vcmp.eq.f32.partialorder %v601_v27, inf  ;;  %v628_v60 = vand.u32 2147483648, %v601_v27  ;;  %vm627_vm13 = vcmp.eq.f32.partialorder %v601_v27, 0.0 }
 0x1ca   :  { %v853_v33 = vpop.eup %852 }
 0x1cb   :  { %v855_v38 = vpop.eup %854  ;;  %v603_v39 = vmul.f32 %v853_v33, %v598_v22 }
 0x1cc   :  { %v617_v42 = vmul.f32 %v855_v38, %v600_v24  ;;  %v857_v46 = vpop.eup %856 }
 0x1cd   :  { %v605_v43 = vsel %vm604_vm3, %v598_v22, %v603_v39  ;;  %v859_v51 = vpop.eup %858  ;;  %v610_v54 = vmul.f32 %v857_v46, %v599_v26 }
 0x1ce   :  { %v608_v47 = vsel %vm606_vm5, %v607_v0, %v605_v43  ;;  %v619_v48 = vsel %vm618_vm6, %v600_v24, %v617_v42  ;;  %v624_v57 = vmul.f32 %v859_v51, %v601_v27 }
 0x1cf   :  { %v634_v52 = vmul.f32 0.47942555, %v608_v47  ;;  %v622_v53 = vsel %vm620_vm8, %v621_v44, %v619_v48  ;;  %v612_v59 = vsel %vm611_vm10, %v599_v26, %v610_v54 }
 0x1d0   :  { %v636_v55 = vmul.f32 0.47942555, %v622_v53  ;;  %v615_v62 = vsel %vm613_vm11, %v614_v56, %v612_v59  ;;  %v626_v63 = vsel %vm625_vm12, %v601_v27, %v624_v57 }
 0x1d1   :  { %v638_v58 = vsub.f32 %v630_v34, %v634_v52  ;;  %v635_v3 = vmul.f32 0.47942555, %v615_v62  ;;  %v629_v4 = vsel %vm627_vm13, %v628_v60, %v626_v63 }
 0x1d2   :  { %v640_v61 = vsub.f32 %v632_v41, %v636_v55  ;;  %v637_v12 = vmul.f32 0.47942555, %v629_v4 }
 0x1d3   :  { %v650_v1 = vsel %vm642_vm2, %v638_v58, %v798_v40  ;;  %v639_v15 = vsub.f32 %v631_v2, %v635_v3 }
 0x1d4   :  { %v664_v5 = vsel %vm1129_vm0, %v650_v1, %v1103_v6  ;;  %v652_v8 = vsel %vm644_vm4, %v640_v61, %v800_v49  ;;  %v641_v6 = vsub.f32 %v633_v9, %v637_v12 }
 0x1d5   :  { %v1166_v13 = vmul.f32 10.0, %v664_v5  ;;  %v666_v14 = vsel %vm1135_vm1, %v652_v8, %v1105_v7  ;;  %v651_v20 = vsel %vm643_vm14, %v639_v15, %v799_v16 }
 0x1d6   :  { %v1172_v17 = vmul.f32 10.0, %v666_v14  ;;  %v665_v7 = vsel %vm1146_vm7, %v651_v20, %v1107_v10  ;;  %v653_v22 = vsel %vm645_vm15, %v641_v6, %v801_v18 }
 0x1d7   :  { %v684_v19 = vand.u32 2147483647, %v1166_v13  ;;  %v669_v24 = vmul.f32 10.0, %v665_v7  ;;  %v667_v25 = vsel %vm1153_vm9, %v653_v22, %v1109_v11  ;;  %v672_v52 = vmax.f32 %v1166_v13, 0.0 }
 0x1d8   :  { %v686_v21 = vand.u32 2147483647, %v1172_v17  ;;  %v1185_v27 = vmul.f32 10.0, %v667_v25  ;;  %v676_v55 = vmul.f32 %v1166_v13, %v656_v30  ;;  %v674_v58 = vmax.f32 %v1172_v17, 0.0 }
 0x1d9   :  { %v688_v23 = vsub.f32 0.0, %v684_v19  ;;  %v685_v34 = vand.u32 2147483647, %v669_v24  ;;  %v673_v56 = vmax.f32 %v669_v24, 0.0  ;;  %v677_v57 = vmul.f32 %v669_v24, %v657_v32 }
 0x1da   :  { %v690_v26 = vsub.f32 0.0, %v686_v21  ;;  %v687_v36 = vand.u32 2147483647, %v1185_v27  ;;  %v678_v30 = vmul.f32 %v1172_v17, %v658_v31  ;;  %v675_v8 = vmax.f32 %v1185_v27, 0.0 }
 0x1db   :  { %v692_v33 = vmul.f32 1.442695, %v688_v23  ;;  %v689_v38 = vsub.f32 0.0, %v685_v34  ;;  %v679_v9 = vmul.f32 %v1185_v27, %v659_v37  ;;  %v680_v12 = vsub.f32 %v672_v52, %v676_v55 }
 0x1dc   :  { %v696_v35 = vmul.f32 1.442695, %v690_v26  ;;  %v691_v39 = vsub.f32 0.0, %v687_v36  ;;  %v681_v15 = vsub.f32 %v673_v56, %v677_v57  ;;  %v682_v7 = vsub.f32 %v674_v58, %v678_v30 }
 0x1dd   :  { %860 = vpow2.f32 %v692_v33  ;;  %v694_v10 = vmul.f32 1.442695, %v689_v38  ;;  %v683_v23 = vsub.f32 %v675_v8, %v679_v9 }
 0x1de   :  { %862 = vpow2.f32 %v696_v35  ;;  %v698_v40 = vmul.f32 1.442695, %v691_v39 }
 0x1df   :  { %864 = vpow2.f32 %v694_v10 }
 0x1e0   :  { %866 = vpow2.f32 %v698_v40 }
 0x1e7   :  { %v861_v41 = vpop.eup %860 }
 0x1e8   :  { %v863_v0 = vpop.eup %862  ;;  %v700_v42 = vadd.f32 1.0, %v861_v41  ;;  %v703_v46 = vmul.f32 -0.5, %v861_v41  ;;  %v706_v51 = vand.u32 2147483647, %v861_v41 }
 0x1e9   :  { %v718_v11 = vadd.f32 1.0, %v863_v0  ;;  %v865_v43 = vpop.eup %864  ;;  %v721_v50 = vmul.f32 -0.5, %v863_v0  ;;  %v724_v3 = vand.u32 2147483647, %v863_v0 }
 0x1ea   :  { %868 = vlog2.f32 %v700_v42  ;;  %v867_v44 = vpop.eup %866  ;;  %v709_v45 = vadd.f32 1.0, %v865_v43  ;;  %v704_v48 = vadd.f32 1.0, %v703_v46  ;;  %v712_v49 = vmul.f32 -0.5, %v865_v43 }
 0x1eb   :  { %870 = vlog2.f32 %v718_v11  ;;  %v727_v47 = vadd.f32 1.0, %v867_v44  ;;  %v730_v53 = vmul.f32 -0.5, %v867_v44  ;;  %v722_v63 = vadd.f32 1.0, %v721_v50 }
 0x1ec   :  { %872 = vlog2.f32 %v709_v45  ;;  %v705_v61 = vmul.f32 %v861_v41, %v704_v48  ;;  %v713_v62 = vadd.f32 1.0, %v712_v49  ;;  %vm1195_vm0 = vcmp.lt.f32.partialorder %v706_v51, 0.0004427343 }
 0x1ed   :  { %874 = vlog2.f32 %v727_v47  ;;  %v715_v2 = vand.u32 2147483647, %v865_v43  ;;  %v731_v4 = vadd.f32 1.0, %v730_v53  ;;  %v733_v13 = vand.u32 2147483647, %v867_v44 }
 0x1ee   :  { %v714_v6 = vmul.f32 %v865_v43, %v713_v62  ;;  %v723_v18 = vmul.f32 %v863_v0, %v722_v63  ;;  %vm725_vm2 = vcmp.lt.f32.partialorder %v724_v3, 0.0004427343 }
 0x1ef   :  { %vm716_vm1 = vcmp.lt.f32.partialorder %v715_v2, 0.0004427343  ;;  %v732_v21 = vmul.f32 %v867_v44, %v731_v4  ;;  %vm734_vm3 = vcmp.lt.f32.partialorder %v733_v13, 0.0004427343 }
 0x1f4   :  { %v869_v54 = vpop.eup %868 }
 0x1f5   :  { %v871_v59 = vpop.eup %870  ;;  %v702_v60 = vmul.f32 0.6931472, %v869_v54 }
 0x1f6   :  { %v720_v32 = vmul.f32 0.6931472, %v871_v59  ;;  %v873_v5 = vpop.eup %872 }
 0x1f7   :  { %v708_v28 = vsel %vm1195_vm0, %v705_v61, %v702_v60  ;;  %v875_v14 = vpop.eup %874  ;;  %v711_v16 = vmul.f32 0.6931472, %v873_v5 }
 0x1f8   :  { %v729_v31 = vmul.f32 0.6931472, %v875_v14  ;;  %v736_v17 = vadd.f32 %v708_v28, %v680_v12  ;;  %v726_v20 = vsel %vm725_vm2, %v723_v18, %v720_v32 }
 0x1f9   :  { %v717_v19 = vsel %vm716_vm1, %v714_v6, %v711_v16  ;;  %v738_v37 = vadd.f32 %v726_v20, %v682_v7 }
 0x1fa   :  { %v737_v22 = vadd.f32 %v717_v19, %v681_v15  ;;  %v735_v29 = vsel %vm734_vm3, %v732_v21, %v729_v31 }
 0x1fb   :  { %v739_v25 = vadd.f32 %v735_v29, %v683_v23 }
 0x1fc   :  { %v741_v24 = vadd.f32 %v737_v22, %v736_v17 }
 0x1fe   :  { %v742_v26 = vadd.f32 %v741_v24, %v738_v37 }
 0x200   :  { %v743_v27 = vadd.f32 %v742_v26, %v739_v25 }
 0x202   :  { %745 = vst [vmem:[#allocation9] sm:$0xff] %v743_v27 }
 0x203   :  { %953 = shalt.err (!%p950_p0)
}
 0x204   :  { %s954_s25 = scalar_lea.hbm %s1223_s3, 128 }
 0x205   :  { %p955_p1 = scmp.ne.s32.totalorder %s1223_s3, %s954_s25  ;;  %p958_p2 = scmp.lt.u32.totalorder %s954_s25, %s1223_s3 }
 0x207   :  { %p960_p3 = pnand %p958_p2, %p955_p1 }
 0x209   :  { %963 = shalt.err (!%p960_p3)
}
 0x20a   :  { %755 = dma.vmem_to_hbm [thread:$0]  %s753_s21, 128, %s1223_s3, [#allocation5]  }
 0x20b   :  { %968 = dma.done.wait [#allocation5], 128  }
 0x20c   :  { %969 = vsyncadd [#allocation5], 4294967168 }
 0x20d   :  { %759 = vsyncpa [#allocation4], 1 }
 0x20e   :  { %760 = vsyncpa [#allocation7], 1 }
 0x20f   :  { %761 = vsyncpa [#allocation5], 1 }

</bundles_post_ra>
